<compile_context>
chip_gen: v7x
topology: tpu7x:2x2x1
jax: 0.10.0
libtpu: 0.0.40
codegen_flags: <defaults>
</compile_context>

<pallas_src>
import functools

import jax
import jax.numpy as jnp
from jax.experimental import pallas as pl
from jax.experimental.pallas import tpu as pltpu


def _ce_kernel(labels_ref, logits_ref, out_ref, acc_ref, *,
               inv_temp, smoothing, num_classes, tb, bpc, true_batch):
    c = pl.program_id(0)          # chunk (outer, "parallel" -> dual-TC on v7x)
    i = pl.program_id(1)          # block within chunk (inner, "arbitrary")

    @pl.when(i == 0)
    def _():
        acc_ref[...] = jnp.zeros_like(acc_ref)

    # Upcast (possibly bf16) logits in-VMEM. Temperature is folded into the exp
    # argument and the (tb, 1) vectors instead of rescaling the whole tile.
    z = logits_ref[...].astype(jnp.float32)                           # (tb, C)
    m = jnp.max(z, axis=-1, keepdims=True)                            # (tb, 1)
    zm = z - m
    p = jnp.exp(zm * inv_temp) if inv_temp != 1.0 else jnp.exp(zm)    # EUP
    s = jnp.sum(p, axis=-1, keepdims=True)                            # XLU reduce
    lse = (m * inv_temp if inv_temp != 1.0 else m) + jnp.log(s)       # scaled lse

    # Single fused target-weighted reduction:
    #   row_loss = lse_scaled - inv_temp * sum_c(w_c * z_c),
    #   w = (1-eps)*onehot + eps/C   (sums to 1).
    cls = jax.lax.broadcasted_iota(jnp.int32, z.shape, 1)
    hit = cls == labels_ref[...]
    if smoothing:
        on = 1.0 - smoothing + smoothing / num_classes
        off = smoothing / num_classes
        wz = jnp.where(hit, on, off) * z
    else:
        wz = jnp.where(hit, z, 0.0)
    tsum = jnp.sum(wz, axis=-1, keepdims=True)                        # (tb, 1)
    row_loss = lse - (tsum * inv_temp if inv_temp != 1.0 else tsum)

    # Mask padded / ragged / duplicated rows. Uses the *unclamped* global block
    # position, so clamped duplicate blocks contribute exactly 0; the jnp.where
    # select also squashes NaN/Inf coming from undefined ragged-block rows.
    row = (c * bpc + i) * tb + jax.lax.broadcasted_iota(jnp.int32, (tb, 1), 0)
    acc_ref[...] += jnp.where(row < true_batch, row_loss, 0.0)

    @pl.when(i == pl.num_programs(1) - 1)
    def _():
        total = jnp.sum(acc_ref[...], axis=(0, 1), keepdims=True)     # (1, 1)
        out_ref[...] = jnp.broadcast_to(total, out_ref.shape)         # (8, 1)


def _ceil_to(x, m):
    return ((x + m - 1) // m) * m


def _plan_blocks(B, C, *, max_block_bytes, max_tb, n_chunks_hint=2):
    """Pick (tb, n_chunks, blocks_per_chunk, nb_real) for the (chunk, block) grid.

    tb is sized against the f32 working set (the kernel upcasts in-VMEM) and then
    rebalanced so the grid blocks cover ceil8(B) as evenly as possible (no tb-sized
    over-padding). nb_real is the number of blocks that actually touch data; grid
    positions beyond it are clamped in the index_map and fully masked in-kernel.
    """
    b_pad8 = _ceil_to(B, 8)
    tb = max_block_bytes // max(1, C * 4)            # f32 sizing, any input dtype
    tb = max(8, min(max_tb, (tb // 8) * 8))
    tb = min(tb, b_pad8)
    nb = -(-b_pad8 // tb)
    n_chunks = n_chunks_hint if nb >= n_chunks_hint else 1
    bpc = -(-nb // n_chunks)
    grid_blocks = n_chunks * bpc
    tb = max(8, _ceil_to(-(-b_pad8 // grid_blocks), 8))   # rebalance (only shrinks)
    nb_real = -(-b_pad8 // tb)                            # <= grid_blocks
    return tb, n_chunks, bpc, nb_real, b_pad8


def cross_entropy_pallas(logits, labels, *, temp=1.0, label_smoothing=0.0,
                         max_block_bytes=4 * 1024 * 1024, max_tb=1024,
                         vmem_limit_bytes=32 * 1024 * 1024):
    """Mean cross-entropy of logits/temp vs integer labels, computed in a Pallas kernel."""
    B, C = logits.shape
    itemsize = jnp.dtype(logits.dtype).itemsize
    tb, n_chunks, bpc, nb_real, b_pad8 = _plan_blocks(
        B, C, max_block_bytes=max_block_bytes, max_tb=max_tb)

    # Only the tiny labels array is padded (to a multiple of 8); logits stay as-is.
    labels2d = labels.astype(jnp.int32).reshape(B, 1)
    if b_pad8 != B:
        labels2d = jnp.pad(labels2d, ((0, b_pad8 - B), (0, 0)))

    if n_chunks * bpc == nb_real:
        def block_index(c, i):
            return c * bpc + i
    else:
        def block_index(c, i):
            return jnp.minimum(c * bpc + i, nb_real - 1)

    kernel = functools.partial(
        _ce_kernel,
        inv_temp=float(1.0 / temp),
        smoothing=float(label_smoothing),
        num_classes=float(C),
        tb=tb,
        bpc=bpc,
        true_batch=B,
    )

    cost = pl.CostEstimate(
        flops=int(6 * B * C),
        transcendentals=int(B * C),
        bytes_accessed=int(B * C * itemsize + b_pad8 * 4 + n_chunks * 8 * 4),
    )

    out = pl.pallas_call(
        kernel,
        out_shape=jax.ShapeDtypeStruct((n_chunks * 8, 1), jnp.float32),
        grid_spec=pltpu.PrefetchScalarGridSpec(
            num_scalar_prefetch=0,
            grid=(n_chunks, bpc),
            in_specs=[
                pl.BlockSpec((tb, 1), lambda c, i: (block_index(c, i), 0)),   # labels
                pl.BlockSpec((tb, C), lambda c, i: (block_index(c, i), 0)),   # logits
            ],
            out_specs=pl.BlockSpec((8, 1), lambda c, i: (c, 0)),
            scratch_shapes=[pltpu.VMEM((tb, 1), jnp.float32)],
        ),
        compiler_params=pltpu.CompilerParams(
            dimension_semantics=("parallel", "arbitrary"),
            vmem_limit_bytes=vmem_limit_bytes),
        cost_estimate=cost,
    )(labels2d, logits)

    partials = out[0::8, 0]                 # one partial sum per chunk
    return jnp.sum(partials) * (1.0 / B)


class SoftmaxPallas:
    """JAX/Pallas equivalent of the PyTorch `Softmax` loss module."""

    def __init__(self, **options):
        self.temp = options["temp"]
        self.label_smoothing = options["label_smoothing"]

    def __call__(self, x, y, labels=None):
        logits = y
        if labels is None:
            return logits, 0
        loss = cross_entropy_pallas(
            logits, labels, temp=self.temp, label_smoothing=self.label_smoothing)
        return logits, loss


def _reference_loss(logits, labels, temp, smoothing):
    z = logits.astype(jnp.float32) / temp
    logp = jax.nn.log_softmax(z, axis=-1)
    C = logits.shape[-1]
    onehot = jax.nn.one_hot(labels, C, dtype=jnp.float32)
    target = (1.0 - smoothing) * onehot + smoothing / C
    return jnp.mean(-jnp.sum(target * logp, axis=-1))


if __name__ == "__main__":
    key = jax.random.PRNGKey(0)
    k1, k2, k3, k4, k5 = jax.random.split(key, 5)

    B, D, C = 8, 64, 32
    x = jax.random.normal(k1, (B, D), dtype=jnp.float32)      # embeddings (unused by loss)
    y = jax.random.normal(k2, (B, C), dtype=jnp.float32)      # logits
    labels = jax.random.randint(k3, (B,), 0, C, dtype=jnp.int32)

    # Case 1: plain cross-entropy with temperature.
    head = SoftmaxPallas(temp=0.5, label_smoothing=0.0)
    logits_out, loss = head(x, y, labels)
    loss = jax.block_until_ready(loss)
    ref = _reference_loss(y, labels, 0.5, 0.0)
    assert jnp.allclose(loss, ref, atol=1e-4, rtol=1e-4), (loss, ref)

    # Case 2: label smoothing enabled.
    head_ls = SoftmaxPallas(temp=1.0, label_smoothing=0.1)
    _, loss_ls = head_ls(x, y, labels)
    loss_ls = jax.block_until_ready(loss_ls)
    ref_ls = _reference_loss(y, labels, 1.0, 0.1)
    assert jnp.allclose(loss_ls, ref_ls, atol=1e-4, rtol=1e-4), (loss_ls, ref_ls)

    # Case 3: labels=None path returns (logits, 0).
    logits_only, zero = head(x, y, None)
    assert zero == 0 and logits_only.shape == (B, C)

    # Case 4: bf16 logits, ragged batch (no logits padding; in-kernel row mask).
    B2, C2 = 20, 160
    y2 = jax.random.normal(k4, (B2, C2), dtype=jnp.float32).astype(jnp.bfloat16)
    labels2 = jax.random.randint(k5, (B2,), 0, C2, dtype=jnp.int32)
    head2 = SoftmaxPallas(temp=2.0, label_smoothing=0.05)
    _, loss2 = head2(None, y2, labels2)
    loss2 = jax.block_until_ready(loss2)
    ref2 = _reference_loss(y2.astype(jnp.float32), labels2, 2.0, 0.05)
    assert jnp.allclose(loss2, ref2, atol=1e-4, rtol=1e-4), (loss2, ref2)

    # Case 5: force a small tile to exercise the 2-chunk grid, block-index clamping,
    # and the ragged last block all at once (B=20, tb=8 -> grid (2, 2), 3 real blocks).
    loss3 = cross_entropy_pallas(y2, labels2, temp=0.7, label_smoothing=0.1, max_tb=8)
    loss3 = jax.block_until_ready(loss3)
    ref3 = _reference_loss(y2.astype(jnp.float32), labels2, 0.7, 0.1)
    assert jnp.allclose(loss3, ref3, atol=1e-4, rtol=1e-4), (loss3, ref3)

    print("KERNEL_OK")
</pallas_src>

<mosaic_0001>
module attributes {stable_mosaic.version = 11 : i64} {
  func.func @_ce_kernel(%arg0: i32, %arg1: i32, %arg2: memref<8x1xi32, #tpu.memory_space<vmem>>, %arg3: memref<8x32xf32, #tpu.memory_space<vmem>>, %arg4: memref<8x1xf32, #tpu.memory_space<vmem>>, %arg5: memref<8x1xf32, #tpu.memory_space<vmem>>) attributes {dimension_semantics = [#tpu.dimension_semantics<parallel>, #tpu.dimension_semantics<arbitrary>], iteration_bounds = array<i64: 1, 1>, scalar_prefetch = 0 : i64, scratch_operands = 1 : i64, tpu.core_type = #tpu.core_type<tc>, window_params = [{transform_indices = @transform_0, window_bounds = array<i64: 8, 1>}, {transform_indices = @transform_1, window_bounds = array<i64: 8, 32>}, {transform_indices = @transform_2, window_bounds = array<i64: 8, 1>}]} {
    %c0_i32 = arith.constant 0 : i32
    %0 = arith.cmpi eq, %arg1, %c0_i32 : i32
    %1 = arith.extui %0 : i1 to i32
    %c0_i32_0 = arith.constant 0 : i32
    %2 = arith.cmpi ne, %1, %c0_i32_0 : i32
    scf.if %2 {
      %cst_18 = arith.constant 0.000000e+00 : f32
      %44 = vector.broadcast %cst_18 : f32 to vector<8x1xf32>
      %c0_19 = arith.constant 0 : index
      %c0_20 = arith.constant 0 : index
      %45 = vector.load %arg5[%c0_19, %c0_20] : memref<8x1xf32, #tpu.memory_space<vmem>>, vector<8x1xf32>
      tpu.vector_store %arg5[%c0_19, %c0_20], %44 {strides = array<i32>} : memref<8x1xf32, #tpu.memory_space<vmem>>, vector<8x1xf32>,
    } else {
    }
    %c0 = arith.constant 0 : index
    %c0_1 = arith.constant 0 : index
    %3 = vector.load %arg3[%c0, %c0_1] : memref<8x32xf32, #tpu.memory_space<vmem>>, vector<8x32xf32>
    %cst = arith.constant dense<0xFF800000> : vector<8xf32>
    %4 = vector.multi_reduction <maximumf>, %3, %cst [1] : vector<8x32xf32> to vector<8xf32>
    %5 = vector.shape_cast %4 : vector<8xf32> to vector<8x1xf32>
    %6 = vector.broadcast %5 : vector<8x1xf32> to vector<8x32xf32>
    %7 = arith.subf %3, %6 : vector<8x32xf32>
    %cst_2 = arith.constant 2.000000e+00 : f32
    %8 = vector.broadcast %cst_2 : f32 to vector<8x32xf32>
    %9 = arith.mulf %7, %8 : vector<8x32xf32>
    %10 = math.exp %9 : vector<8x32xf32>
    %cst_3 = arith.constant dense<0.000000e+00> : vector<8xf32>
    %11 = vector.multi_reduction <add>, %10, %cst_3 [1] : vector<8x32xf32> to vector<8xf32>
    %12 = vector.shape_cast %11 : vector<8xf32> to vector<8x1xf32>
    %cst_4 = arith.constant 2.000000e+00 : f32
    %13 = vector.broadcast %cst_4 : f32 to vector<8x1xf32>
    %14 = arith.mulf %5, %13 : vector<8x1xf32>
    %15 = math.log %12 : vector<8x1xf32>
    %16 = arith.addf %14, %15 : vector<8x1xf32>
    %17 = tpu.iota {dimensions = array<i32: 1>} : vector<8x32xi32>
    %c0_5 = arith.constant 0 : index
    %c0_6 = arith.constant 0 : index
    %18 = vector.load %arg2[%c0_5, %c0_6] : memref<8x1xi32, #tpu.memory_space<vmem>>, vector<8x1xi32>
    %19 = vector.broadcast %18 : vector<8x1xi32> to vector<8x32xi32>
    %20 = arith.cmpi eq, %17, %19 : vector<8x32xi32>
    %cst_7 = arith.constant 0.000000e+00 : f32
    %21 = vector.broadcast %cst_7 : f32 to vector<8x32xf32>
    %22 = arith.select %20, %3, %21 : vector<8x32xi1>, vector<8x32xf32>
    %cst_8 = arith.constant dense<0.000000e+00> : vector<8xf32>
    %23 = vector.multi_reduction <add>, %22, %cst_8 [1] : vector<8x32xf32> to vector<8xf32>
    %24 = vector.shape_cast %23 : vector<8xf32> to vector<8x1xf32>
    %cst_9 = arith.constant 2.000000e+00 : f32
    %25 = vector.broadcast %cst_9 : f32 to vector<8x1xf32>
    %26 = arith.mulf %24, %25 : vector<8x1xf32>
    %27 = arith.subf %16, %26 : vector<8x1xf32>
    %c1_i32 = arith.constant 1 : i32
    %28 = arith.muli %arg0, %c1_i32 : i32
    %29 = arith.addi %28, %arg1 : i32
    %c8_i32 = arith.constant 8 : i32
    %30 = arith.muli %29, %c8_i32 : i32
    %31 = tpu.iota {dimensions = array<i32: 0>} : vector<8x1xi32>
    %32 = vector.broadcast %30 : i32 to vector<8x1xi32>
    %33 = arith.addi %32, %31 : vector<8x1xi32>
    %c0_10 = arith.constant 0 : index
    %c0_11 = arith.constant 0 : index
    %34 = vector.load %arg5[%c0_10, %c0_11] : memref<8x1xf32, #tpu.memory_space<vmem>>, vector<8x1xf32>
    %c8_i32_12 = arith.constant 8 : i32
    %35 = vector.broadcast %c8_i32_12 : i32 to vector<8x1xi32>
    %36 = arith.cmpi slt, %33, %35 : vector<8x1xi32>
    %cst_13 = arith.constant 0.000000e+00 : f32
    %37 = vector.broadcast %cst_13 : f32 to vector<8x1xf32>
    %38 = arith.select %36, %27, %37 : vector<8x1xi1>, vector<8x1xf32>
    %39 = arith.addf %34, %38 : vector<8x1xf32>
    %c0_14 = arith.constant 0 : index
    %c0_15 = arith.constant 0 : index
    %40 = vector.load %arg5[%c0_14, %c0_15] : memref<8x1xf32, #tpu.memory_space<vmem>>, vector<8x1xf32>
    tpu.vector_store %arg5[%c0_14, %c0_15], %39 {strides = array<i32>} : memref<8x1xf32, #tpu.memory_space<vmem>>, vector<8x1xf32>,
    %c0_i32_16 = arith.constant 0 : i32
    %41 = arith.cmpi eq, %arg1, %c0_i32_16 : i32
    %42 = arith.extui %41 : i1 to i32
    %c0_i32_17 = arith.constant 0 : i32
    %43 = arith.cmpi ne, %42, %c0_i32_17 : i32
    scf.if %43 {
      %c0_18 = arith.constant 0 : index
      %c0_19 = arith.constant 0 : index
      %44 = vector.load %arg5[%c0_18, %c0_19] : memref<8x1xf32, #tpu.memory_space<vmem>>, vector<8x1xf32>
      %45 = vector.shape_cast %44 : vector<8x1xf32> to vector<1x8x1xf32>
      %cst_20 = arith.constant dense<0.000000e+00> : vector<1xf32>
      %46 = vector.multi_reduction <add>, %45, %cst_20 [1, 2] : vector<1x8x1xf32> to vector<1xf32>
      %47 = vector.shape_cast %46 : vector<1xf32> to vector<1x1x1xf32>
      %48 = vector.extract %47[0, 0, 0] : f32 from vector<1x1x1xf32>
      %49 = vector.broadcast %48 : f32 to vector<1x1xf32>
      %50 = vector.shape_cast %49 : vector<1x1xf32> to vector<1x1xf32>
      %51 = vector.broadcast %50 : vector<1x1xf32> to vector<8x1xf32>
      %c0_21 = arith.constant 0 : index
      %c0_22 = arith.constant 0 : index
      %52 = vector.load %arg4[%c0_21, %c0_22] : memref<8x1xf32, #tpu.memory_space<vmem>>, vector<8x1xf32>
      tpu.vector_store %arg4[%c0_21, %c0_22], %51 {strides = array<i32>} : memref<8x1xf32, #tpu.memory_space<vmem>>, vector<8x1xf32>,
    } else {
    }
    return
  }
  func.func @transform_0(%arg0: i32, %arg1: i32) -> (i32, i32) {
    %c1_i32 = arith.constant 1 : i32
    %0 = arith.muli %arg0, %c1_i32 : i32
    %1 = arith.addi %0, %arg1 : i32
    %c0_i32 = arith.constant 0 : i32
    %c0_i32_0 = arith.constant 0 : i32
    return %1, %c0_i32 : i32, i32
  }
  func.func @transform_1(%arg0: i32, %arg1: i32) -> (i32, i32) {
    %c1_i32 = arith.constant 1 : i32
    %0 = arith.muli %arg0, %c1_i32 : i32
    %1 = arith.addi %0, %arg1 : i32
    %c0_i32 = arith.constant 0 : i32
    %c0_i32_0 = arith.constant 0 : i32
    return %1, %c0_i32 : i32, i32
  }
  func.func @transform_2(%arg0: i32, %arg1: i32) -> (i32, i32) {
    %c0_i32 = arith.constant 0 : i32
    %c0_i32_0 = arith.constant 0 : i32
    return %arg0, %c0_i32 : i32, i32
  }
}

</mosaic_0001>

<bundles_post_ra>
// kernel: tpu_custom_call.1
= control target key start
LH: loop header
LB: loop body
LE: loop exit
PB: predicated region body
PF: predicated region fallthrough
CT: control target
= control target key end

     0   :  { %vm52_vm0 = vcmask 261120   ;;  %v133_v1 = vmov 0   ;;  %v67_v8 = vlaneseq  ;;  %vm49_vm2 = vcmask 7168   ;;  %s166_s1 = inlined_call_operand.vmem [shape: f32[8,32], index: 1, kind: input, shape index: {}]   ;;  %s167_s0 = inlined_call_operand.vmem [shape: s32[8,1], index: 0, kind: input, shape index: {}]   ;;  %s168_s2 = inlined_call_operand.vmem [shape: f32[8,1], index: 2, kind: output, shape index: {}]  }
   0x1   :  { %v51_v0 = vld [vmem:[%s166_s1] sm:$0xff]  ;;  %128 = vset.pattern.permute.xlu0 %v133_v1  ;;  %v134_v15 = vmov 0.0  }
   0x2   :  { %v53_v2 = vsel %vm52_vm0, %v51_v0, -inf  ;;  %v69_v3 = vld [vmem:[%s167_s0] sm:$0xff]  ;;  %v68_v9 = vand.u32 127, %v67_v8  ;;  %50 = vst.msk [vmem:[#allocation2] sm:$0xff] %vm49_vm2, %v134_v15 }
   0x3   :  { %54 = vmax.xlane.f32.xlu0 %v53_v2 }
   0x9   :  { %v86_v23 = vld [vmem:[#allocation2] sm:$0xff] }
  0x19   :  { %71 = vperm.xlu0 %128, %v69_v3  }
  0x90   :  { %v55_v4 = vpop.xlane.xlu0 %54 }
  0x91   :  { %v56_v5 = vsub.f32 %v51_v0, %v55_v4  ;;  %v63_v19 = vmul.f32 2.0, %v55_v4 }
  0x93   :  { %v57_v6 = vmul.f32 2.0, %v56_v5 }
  0x95   :  { %v58_v7 = vmul.f32 1.442695, %v57_v6 }
  0x97   :  { %129 = vpow2.f32 %v58_v7 }
  0x98   :  { %v72_v10 = vpop.permute.xlu0 %71 }
  0x99   :  { %vm73_vm1 = vcmp.eq.s32.totalorder %v68_v9, %v72_v10 }
  0x9a   :  { %v74_v12 = vsel %vm73_vm1, %v51_v0, 0.0 }
  0x9b   :  { %v75_v14 = vsel %vm52_vm0, %v74_v12, 0.0 }
  0xa1   :  { %v130_v11 = vpop.eup %129 }
  0xa2   :  { %v60_v13 = vsel %vm52_vm0, %v130_v11, 0.0 }
  0xa3   :  { %61 = vadd.xlane.f32.xlu1 %v60_v13 }
  0xa7   :  { %76 = vadd.xlane.f32.xlu1 %v75_v14 }
 0x130   :  { %v62_v16 = vpop.xlane.xlu1 %61 }
 0x131   :  { %131 = vlog2.f32 %v62_v16 }
 0x134   :  { %v77_v17 = vpop.xlane.xlu1 %76 }
 0x135   :  { %v78_v21 = vmul.f32 2.0, %v77_v17 }
 0x13b   :  { %v132_v18 = vpop.eup %131 }
 0x13c   :  { %v65_v20 = vmul.f32 0.6931472, %v132_v18 }
 0x13e   :  { %v66_v22 = vadd.f32 %v65_v20, %v63_v19 }
 0x140   :  { %v79_v24 = vsub.f32 %v66_v22, %v78_v21 }
 0x142   :  { %v89_v25 = vadd.f32 %v86_v23, %v79_v24 }
 0x144   :  { %91 = vst.msk [vmem:[#allocation2] sm:$0xff] %vm49_vm2, %v89_v25 }
 0x14b   :  { %v95_v26 = vld [vmem:[#allocation2] sm:$0xff] }
 0x14c   :  { %v96_v27 = vsel %vm49_vm2, %v95_v26, 0.0 }
 0x14d   :  { %97 = vadd.xlane.f32.xlu1 %v96_v27 }
 0x1da   :  { %v98_v28 = vpop.xlane.xlu1 %97 }
 0x1db   :  { %v99_v29 = vrot.slane %v98_v28, 4 }
 0x1dd   :  { %v100_v30 = vadd.f32 %v99_v29, %v98_v28 }
 0x1df   :  { %v101_v31 = vrot.slane %v100_v30, 2 }
 0x1e1   :  { %v102_v32 = vadd.f32 %v101_v31, %v100_v30 }
 0x1e3   :  { %v103_v33 = vrot.slane %v102_v32, 1 }
 0x1e5   :  { %v104_v34 = vadd.f32 %v103_v33, %v102_v32 }
 0x1e7   :  { %124 = vpush %v104_v34 }
 0x218   :  { %s125_s0 = spop %124 }
 0x219   :  { %v106_v35 = vstv %s125_s0 }
 0x21a   :  { %107 = vst.msk [vmem:[%s168_s2] sm:$0xff] %vm49_vm2, %v106_v35 }

</bundles_post_ra>
